<compile_context>
chip_gen: v7x
topology: tpu7x:2x2x1
jax: 0.10.0
libtpu: 0.0.40
codegen_flags: <defaults>
</compile_context>

<pallas_src>
import math

import jax
import jax.numpy as jnp
from jax.experimental import pallas as pl
from jax.experimental.pallas import tpu as pltpu

LANE = 128
DEF_TILE_B = 256  # production batch tile (multiple of 128/256 per review)


def multiply_int_tuple(x):
    if not isinstance(x, tuple):
        return x
    res = x[0]
    for v in x[1:]:
        res *= v
    return res


def _round_up(x, m):
    return ((x + m - 1) // m) * m


def _build_arch(in_features, out_features, layers_arch):
    """Mirror ModuleListUtil.build: returns (ops, linear_dims, save_out_features)."""
    work_out = in_features
    ops = []            # sequence of 'linear' / 'lrelu'
    linear_dims = []    # list of (fan_in, fan_out)
    last_is_linear = False
    for layer in layers_arch:
        if isinstance(layer, str):
            last_is_linear = False
            if layer == 'b':
                # TODO(synk): BatchNorm1d ('b') not implemented (not in default arch).
                raise NotImplementedError("BatchNorm1d ('b') not supported")
            elif layer == 'r':
                ops.append('lrelu')
        elif isinstance(layer, int):
            fan_in = multiply_int_tuple(work_out)
            linear_dims.append((fan_in, layer))
            ops.append('linear')
            work_out = layer
            last_is_linear = True
    if out_features > 0 and (not last_is_linear):
        fan_in = multiply_int_tuple(work_out)
        linear_dims.append((fan_in, out_features))
        ops.append('linear')
        work_out = out_features
    save_out = work_out if isinstance(work_out, tuple) else (work_out,)
    return ops, linear_dims, save_out


def _make_critic_kernel(state_ops, n_state_lin, action_ops, n_action_lin,
                        combine_ops, negative_slope=0.01):
    """Fused Critic forward.

    Ref order: state, action,
               (w,b) x n_state_lin, (w,b) x n_action_lin,
               wc_state, wc_action, bc,              # split first combine linear
               (w,b) x (n_combine_lin - 1),
               out
    """

    def _dot(h, w_ref):
        # bf16 MXU matmul, f32 accumulation.
        return jnp.dot(h.astype(jnp.bfloat16), w_ref[...],
                       preferred_element_type=jnp.float32)

    def _lrelu(h):
        return jnp.where(h > 0, h, negative_slope * h)

    def kernel(state_ref, action_ref, *refs):
        params = refs[:-1]
        out_ref = refs[-1]
        idx = 0
        s_params = params[idx:idx + 2 * n_state_lin]; idx += 2 * n_state_lin
        a_params = params[idx:idx + 2 * n_action_lin]; idx += 2 * n_action_lin
        wc_s_ref, wc_a_ref, bc_ref = params[idx:idx + 3]; idx += 3
        c_params = params[idx:]

        def run_branch(h, ops, branch_params):
            li = 0
            for op in ops:
                if op == 'linear':
                    h = _dot(h, branch_params[2 * li]) + branch_params[2 * li + 1][...]
                    li += 1
                elif op == 'lrelu':
                    h = _lrelu(h)
            return h

        hs = run_branch(state_ref[...], state_ops, s_params)    # f32 activations
        ha = run_branch(action_ref[...], action_ops, a_params)

        # Combine branch: first linear consumes [hs | ha] via split weights.
        h = None
        li = 0
        for op in combine_ops:
            if op == 'linear':
                if li == 0:
                    h = _dot(hs, wc_s_ref) + _dot(ha, wc_a_ref) + bc_ref[...]
                else:
                    h = (_dot(h, c_params[2 * (li - 1)])
                         + c_params[2 * (li - 1) + 1][...])
                li += 1
            elif op == 'lrelu':
                if li == 0:
                    hs = _lrelu(hs)
                    ha = _lrelu(ha)
                else:
                    h = _lrelu(h)
        out_ref[...] = h.astype(out_ref.dtype)

    return kernel


def _init_linear(key, fi, fo):
    """torch: xavier_uniform_ weight, default U(+-1/sqrt(fan_in)) bias."""
    kw, kb = jax.random.split(key)
    wb = math.sqrt(6.0 / (fi + fo))
    w = jax.random.uniform(kw, (fi, fo), jnp.float32, -wb, wb)
    bb = 1.0 / math.sqrt(fi)
    b = jax.random.uniform(kb, (1, fo), jnp.float32, -bb, bb)
    return w, b


def _pad_branch(raw_params, in_pad):
    """Zero-pad each (w,b) to lane-dense shapes; weights -> bf16, biases f32."""
    padded = []
    cur = in_pad
    for (w, b) in raw_params:
        fi, fo = w.shape
        fo_pad = _round_up(fo, LANE)
        wp = jnp.zeros((cur, fo_pad), jnp.float32).at[:fi, :fo].set(w)
        bp = jnp.zeros((1, fo_pad), jnp.float32).at[:, :fo].set(b)
        padded.extend([wp.astype(jnp.bfloat16), bp])
        cur = fo_pad
    return padded, cur


class CriticPallas:
    """Critic (Value) model with its forward pass as a single fused Pallas kernel."""

    def __init__(self, state_shape, action_size, num_agents=1,
                 layers_arch=((100,), (50,), (50,)), key=jax.random.PRNGKey(0)):
        # TODO(synk): num_agents > 1 interleaves per-agent features in the
        # combine layer input; only the default num_agents == 1 is implemented.
        assert num_agents == 1, "num_agents > 1 not supported"
        self.state_shape = state_shape if isinstance(state_shape, tuple) else (state_shape,)
        self.action_size = action_size
        self.num_agents = num_agents

        self.s_in = multiply_int_tuple(self.state_shape)
        self.a_in = action_size
        self.s_in_pad = _round_up(self.s_in, LANE)
        self.a_in_pad = _round_up(self.a_in, LANE)

        # Branch architectures (mirror ModuleListUtil.build).
        self.state_ops, s_dims, s_out_feats = _build_arch(self.state_shape, 0,
                                                          list(layers_arch[0]))
        self.action_ops, a_dims, a_out_feats = _build_arch((action_size,), 0,
                                                           list(layers_arch[1]))
        self.s_out = multiply_int_tuple(s_out_feats)
        self.a_out = multiply_int_tuple(a_out_feats)
        combine_in = num_agents * (self.s_out + self.a_out)
        self.combine_ops, c_dims, c_out_feats = _build_arch((combine_in,), num_agents,
                                                            list(layers_arch[2]))
        self.out_dim = multiply_int_tuple(c_out_feats)

        # ---- parameters (raw, torch-equivalent; then padded for the kernel) ----
        self.state_raw, self.action_raw, self.combine_raw = [], [], []
        for dims, store in ((s_dims, self.state_raw),
                            (a_dims, self.action_raw),
                            (c_dims, self.combine_raw)):
            for (fi, fo) in dims:
                key, k = jax.random.split(key)
                store.append(_init_linear(k, fi, fo))

        self.state_pad, s_branch_out_pad = _pad_branch(self.state_raw, self.s_in_pad)
        self.action_pad, a_branch_out_pad = _pad_branch(self.action_raw, self.a_in_pad)

        # Split the first combine linear into state-part / action-part weights.
        w0, b0 = self.combine_raw[0]
        fo0 = w0.shape[1]
        fo0_pad = _round_up(fo0, LANE)
        w_s = w0[:self.s_out, :]
        w_a = w0[self.s_out:self.s_out + self.a_out, :]
        self.wc_s = (jnp.zeros((s_branch_out_pad, fo0_pad), jnp.float32)
                     .at[:self.s_out, :fo0].set(w_s).astype(jnp.bfloat16))
        self.wc_a = (jnp.zeros((a_branch_out_pad, fo0_pad), jnp.float32)
                     .at[:self.a_out, :fo0].set(w_a).astype(jnp.bfloat16))
        self.bc = jnp.zeros((1, fo0_pad), jnp.float32).at[:, :fo0].set(b0)
        self.combine_rest_pad, self.out_pad = _pad_branch(self.combine_raw[1:], fo0_pad)

        self.all_params = (self.state_pad + self.action_pad
                           + [self.wc_s, self.wc_a, self.bc]
                           + self.combine_rest_pad)
        # padded matmul K*N elements (weights are the shape[0] > 1 params)
        self._padded_matmul_elems = sum(int(p.shape[0]) * int(p.shape[1])
                                        for p in self.all_params if p.shape[0] > 1)

    # ------------------------------------------------------------------ kernel
    def _pallas_forward(self, s2p, a2p, tile_b):
        b_pad = s2p.shape[0]
        grid = (b_pad // tile_b,)

        kernel = _make_critic_kernel(self.state_ops, len(self.state_raw),
                                     self.action_ops, len(self.action_raw),
                                     self.combine_ops)

        in_specs = [pl.BlockSpec((tile_b, self.s_in_pad), lambda i: (i, 0)),
                    pl.BlockSpec((tile_b, self.a_in_pad), lambda i: (i, 0))]
        for p in self.all_params:
            in_specs.append(pl.BlockSpec(p.shape, lambda i: (0, 0)))  # resident
        out_spec = pl.BlockSpec((tile_b, self.out_pad), lambda i: (i, 0))

        flops = 2 * b_pad * self._padded_matmul_elems
        bytes_acc = (b_pad * (self.s_in_pad + self.a_in_pad + self.out_pad) * 4
                     + sum(int(p.size) * p.dtype.itemsize for p in self.all_params))

        fn = pl.pallas_call(
            kernel,
            out_shape=jax.ShapeDtypeStruct((b_pad, self.out_pad), jnp.float32),
            grid_spec=pltpu.PrefetchScalarGridSpec(
                num_scalar_prefetch=0,
                grid=grid,
                in_specs=in_specs,
                out_specs=out_spec,
            ),
            compiler_params=pltpu.CompilerParams(
                dimension_semantics=("parallel",)),
            cost_estimate=pl.CostEstimate(flops=flops, transcendentals=0,
                                          bytes_accessed=bytes_acc),
        )
        return fn(s2p, a2p, *self.all_params)

    # ----------------------------------------------------------------- wrapper
    def __call__(self, state, action):
        state = jnp.asarray(state, jnp.float32)
        action = jnp.asarray(action, jnp.float32)
        s2 = state.reshape(-1, self.s_in)
        a2 = action.reshape(-1, self.a_in)
        b = s2.shape[0]
        assert a2.shape[0] == b, "state/action leading dims must match"

        tile_b = min(DEF_TILE_B, _round_up(b, 8))
        b_pad = _round_up(b, tile_b)
        s2p = jnp.pad(s2, ((0, b_pad - b), (0, self.s_in_pad - self.s_in)))
        a2p = jnp.pad(a2, ((0, b_pad - b), (0, self.a_in_pad - self.a_in)))

        y = self._pallas_forward(s2p, a2p, tile_b)
        return y[:b, :self.out_dim]   # torch returns (flattened_batch, out_dim)

    # --------------------------------------------------------------- reference
    def reference(self, state, action):
        """Pure-JAX reference (same bf16-matmul / f32-accumulate math)."""
        state = jnp.asarray(state, jnp.float32)
        action = jnp.asarray(action, jnp.float32)
        s2 = state.reshape(-1, self.s_in)
        a2 = action.reshape(-1, self.a_in)

        def run(h, ops, raw):
            li = 0
            for op in ops:
                if op == 'linear':
                    w, b = raw[li]
                    h = jnp.dot(h.astype(jnp.bfloat16), w.astype(jnp.bfloat16),
                                preferred_element_type=jnp.float32) + b
                    li += 1
                elif op == 'lrelu':
                    h = jnp.where(h > 0, h, 0.01 * h)
            return h

        hs = run(s2, self.state_ops, self.state_raw)
        ha = run(a2, self.action_ops, self.action_raw)
        x = jnp.concatenate([hs, ha], axis=-1)
        return run(x, self.combine_ops, self.combine_raw)


if __name__ == "__main__":
    key = jax.random.PRNGKey(0)
    k_state, k_action, k_params = jax.random.split(key, 3)

    # Small demo shapes: batch=8, state_dim=32, action_dim=4, num_agents=1.
    # Default layers_arch [[100],[50],[50]] => output shape (8, 50).
    B, STATE_DIM, ACTION_DIM = 8, 32, 4
    state = jax.random.normal(k_state, (B, STATE_DIM), dtype=jnp.float32)
    action = jax.random.normal(k_action, (B, ACTION_DIM), dtype=jnp.float32)

    critic = CriticPallas(state_shape=(STATE_DIM,), action_size=ACTION_DIM,
                          num_agents=1, key=k_params)
    out = critic(state, action)
    jax.block_until_ready(out)

    assert out.shape == (B, 50), out.shape
    ref = critic.reference(state, action)
    max_err = float(jnp.max(jnp.abs(out - ref)))
    assert jnp.allclose(out, ref, atol=1e-2, rtol=1e-2), max_err

    print("KERNEL_OK")
</pallas_src>

<mosaic_0001>
module attributes {stable_mosaic.version = 11 : i64} {
  func.func @kernel(%arg0: i32, %arg1: memref<8x128xf32, #tpu.memory_space<vmem>>, %arg2: memref<8x128xf32, #tpu.memory_space<vmem>>, %arg3: memref<128x128xbf16, #tpu.memory_space<vmem>>, %arg4: memref<1x128xf32, #tpu.memory_space<vmem>>, %arg5: memref<128x128xbf16, #tpu.memory_space<vmem>>, %arg6: memref<1x128xf32, #tpu.memory_space<vmem>>, %arg7: memref<128x128xbf16, #tpu.memory_space<vmem>>, %arg8: memref<128x128xbf16, #tpu.memory_space<vmem>>, %arg9: memref<1x128xf32, #tpu.memory_space<vmem>>, %arg10: memref<8x128xf32, #tpu.memory_space<vmem>>) attributes {dimension_semantics = [#tpu.dimension_semantics<parallel>], iteration_bounds = array<i64: 1>, scalar_prefetch = 0 : i64, scratch_operands = 0 : i64, tpu.core_type = #tpu.core_type<tc>, window_params = [{transform_indices = @transform_0, window_bounds = array<i64: 8, 128>}, {transform_indices = @transform_1, window_bounds = array<i64: 8, 128>}, {pipeline_mode = #tpu.pipeline_mode<synchronous>, transform_indices = @transform_2, window_bounds = array<i64: 128, 128>}, {pipeline_mode = #tpu.pipeline_mode<synchronous>, transform_indices = @transform_3, window_bounds = array<i64: 1, 128>}, {pipeline_mode = #tpu.pipeline_mode<synchronous>, transform_indices = @transform_4, window_bounds = array<i64: 128, 128>}, {pipeline_mode = #tpu.pipeline_mode<synchronous>, transform_indices = @transform_5, window_bounds = array<i64: 1, 128>}, {pipeline_mode = #tpu.pipeline_mode<synchronous>, transform_indices = @transform_6, window_bounds = array<i64: 128, 128>}, {pipeline_mode = #tpu.pipeline_mode<synchronous>, transform_indices = @transform_7, window_bounds = array<i64: 128, 128>}, {pipeline_mode = #tpu.pipeline_mode<synchronous>, transform_indices = @transform_8, window_bounds = array<i64: 1, 128>}, {transform_indices = @transform_9, window_bounds = array<i64: 8, 128>}]} {
    %c0 = arith.constant 0 : index
    %c0_0 = arith.constant 0 : index
    %0 = vector.load %arg1[%c0, %c0_0] : memref<8x128xf32, #tpu.memory_space<vmem>>, vector<8x128xf32>
    %1 = arith.truncf %0 : vector<8x128xf32> to vector<8x128xbf16>
    %c0_1 = arith.constant 0 : index
    %c0_2 = arith.constant 0 : index
    %2 = vector.load %arg3[%c0_1, %c0_2] : memref<128x128xbf16, #tpu.memory_space<vmem>>, vector<128x128xbf16>
    %cst = arith.constant dense<0.000000e+00> : vector<8x128xf32>
    %3 = tpu.matmul %1, %2, %cst {dimension_numbers = #tpu.dot_dimension_numbers<[1], [0], [0], [1], [0, 0, 1, 1], [], []>} : vector<8x128xbf16>, vector<128x128xbf16>, vector<8x128xf32> -> vector<8x128xf32>
    %c0_3 = arith.constant 0 : index
    %c0_4 = arith.constant 0 : index
    %4 = vector.load %arg4[%c0_3, %c0_4] : memref<1x128xf32, #tpu.memory_space<vmem>>, vector<1x128xf32>
    %5 = vector.broadcast %4 : vector<1x128xf32> to vector<8x128xf32>
    %6 = arith.addf %3, %5 : vector<8x128xf32>
    %c0_5 = arith.constant 0 : index
    %c0_6 = arith.constant 0 : index
    %7 = vector.load %arg2[%c0_5, %c0_6] : memref<8x128xf32, #tpu.memory_space<vmem>>, vector<8x128xf32>
    %8 = arith.truncf %7 : vector<8x128xf32> to vector<8x128xbf16>
    %c0_7 = arith.constant 0 : index
    %c0_8 = arith.constant 0 : index
    %9 = vector.load %arg5[%c0_7, %c0_8] : memref<128x128xbf16, #tpu.memory_space<vmem>>, vector<128x128xbf16>
    %cst_9 = arith.constant dense<0.000000e+00> : vector<8x128xf32>
    %10 = tpu.matmul %8, %9, %cst_9 {dimension_numbers = #tpu.dot_dimension_numbers<[1], [0], [0], [1], [0, 0, 1, 1], [], []>} : vector<8x128xbf16>, vector<128x128xbf16>, vector<8x128xf32> -> vector<8x128xf32>
    %c0_10 = arith.constant 0 : index
    %c0_11 = arith.constant 0 : index
    %11 = vector.load %arg6[%c0_10, %c0_11] : memref<1x128xf32, #tpu.memory_space<vmem>>, vector<1x128xf32>
    %12 = vector.broadcast %11 : vector<1x128xf32> to vector<8x128xf32>
    %13 = arith.addf %10, %12 : vector<8x128xf32>
    %14 = arith.truncf %6 : vector<8x128xf32> to vector<8x128xbf16>
    %c0_12 = arith.constant 0 : index
    %c0_13 = arith.constant 0 : index
    %15 = vector.load %arg7[%c0_12, %c0_13] : memref<128x128xbf16, #tpu.memory_space<vmem>>, vector<128x128xbf16>
    %cst_14 = arith.constant dense<0.000000e+00> : vector<8x128xf32>
    %16 = tpu.matmul %14, %15, %cst_14 {dimension_numbers = #tpu.dot_dimension_numbers<[1], [0], [0], [1], [0, 0, 1, 1], [], []>} : vector<8x128xbf16>, vector<128x128xbf16>, vector<8x128xf32> -> vector<8x128xf32>
    %17 = arith.truncf %13 : vector<8x128xf32> to vector<8x128xbf16>
    %c0_15 = arith.constant 0 : index
    %c0_16 = arith.constant 0 : index
    %18 = vector.load %arg8[%c0_15, %c0_16] : memref<128x128xbf16, #tpu.memory_space<vmem>>, vector<128x128xbf16>
    %cst_17 = arith.constant dense<0.000000e+00> : vector<8x128xf32>
    %19 = tpu.matmul %17, %18, %cst_17 {dimension_numbers = #tpu.dot_dimension_numbers<[1], [0], [0], [1], [0, 0, 1, 1], [], []>} : vector<8x128xbf16>, vector<128x128xbf16>, vector<8x128xf32> -> vector<8x128xf32>
    %20 = arith.addf %16, %19 : vector<8x128xf32>
    %c0_18 = arith.constant 0 : index
    %c0_19 = arith.constant 0 : index
    %21 = vector.load %arg9[%c0_18, %c0_19] : memref<1x128xf32, #tpu.memory_space<vmem>>, vector<1x128xf32>
    %22 = vector.broadcast %21 : vector<1x128xf32> to vector<8x128xf32>
    %23 = arith.addf %20, %22 : vector<8x128xf32>
    %c0_20 = arith.constant 0 : index
    %c0_21 = arith.constant 0 : index
    %24 = vector.load %arg10[%c0_20, %c0_21] : memref<8x128xf32, #tpu.memory_space<vmem>>, vector<8x128xf32>
    tpu.vector_store %arg10[%c0_20, %c0_21], %23 {strides = array<i32>} : memref<8x128xf32, #tpu.memory_space<vmem>>, vector<8x128xf32>,
    return
  }
  func.func @transform_0(%arg0: i32) -> (i32, i32) {
    %c0_i32 = arith.constant 0 : i32
    %c0_i32_0 = arith.constant 0 : i32
    return %arg0, %c0_i32 : i32, i32
  }
  func.func @transform_1(%arg0: i32) -> (i32, i32) {
    %c0_i32 = arith.constant 0 : i32
    %c0_i32_0 = arith.constant 0 : i32
    return %arg0, %c0_i32 : i32, i32
  }
  func.func @transform_2(%arg0: i32) -> (i32, i32) {
    %c0_i32 = arith.constant 0 : i32
    %c0_i32_0 = arith.constant 0 : i32
    %c0_i32_1 = arith.constant 0 : i32
    return %c0_i32, %c0_i32_0 : i32, i32
  }
  func.func @transform_3(%arg0: i32) -> (i32, i32) {
    %c0_i32 = arith.constant 0 : i32
    %c0_i32_0 = arith.constant 0 : i32
    %c0_i32_1 = arith.constant 0 : i32
    return %c0_i32, %c0_i32_0 : i32, i32
  }
  func.func @transform_4(%arg0: i32) -> (i32, i32) {
    %c0_i32 = arith.constant 0 : i32
    %c0_i32_0 = arith.constant 0 : i32
    %c0_i32_1 = arith.constant 0 : i32
    return %c0_i32, %c0_i32_0 : i32, i32
  }
  func.func @transform_5(%arg0: i32) -> (i32, i32) {
    %c0_i32 = arith.constant 0 : i32
    %c0_i32_0 = arith.constant 0 : i32
    %c0_i32_1 = arith.constant 0 : i32
    return %c0_i32, %c0_i32_0 : i32, i32
  }
  func.func @transform_6(%arg0: i32) -> (i32, i32) {
    %c0_i32 = arith.constant 0 : i32
    %c0_i32_0 = arith.constant 0 : i32
    %c0_i32_1 = arith.constant 0 : i32
    return %c0_i32, %c0_i32_0 : i32, i32
  }
  func.func @transform_7(%arg0: i32) -> (i32, i32) {
    %c0_i32 = arith.constant 0 : i32
    %c0_i32_0 = arith.constant 0 : i32
    %c0_i32_1 = arith.constant 0 : i32
    return %c0_i32, %c0_i32_0 : i32, i32
  }
  func.func @transform_8(%arg0: i32) -> (i32, i32) {
    %c0_i32 = arith.constant 0 : i32
    %c0_i32_0 = arith.constant 0 : i32
    %c0_i32_1 = arith.constant 0 : i32
    return %c0_i32, %c0_i32_0 : i32, i32
  }
  func.func @transform_9(%arg0: i32) -> (i32, i32) {
    %c0_i32 = arith.constant 0 : i32
    %c0_i32_0 = arith.constant 0 : i32
    return %arg0, %c0_i32 : i32, i32
  }
}

</mosaic_0001>

<bundles_post_ra>
// kernel: tpu_custom_call.1
= control target key start
LH: loop header
LB: loop body
LE: loop exit
PB: predicated region body
PF: predicated region fallthrough
CT: control target
= control target key end

     0   :  { %14 = vsyncpa [#allocation3], 0  ;;  %s1139_s0 = inlined_call_operand.hbm [shape: f32[8,128], index: 0, kind: input, shape index: {}]   ;;  %s1140_s1 = inlined_call_operand.hbm [shape: f32[8,128], index: 1, kind: input, shape index: {}]   ;;  %s1141_s2 = inlined_call_operand.hbm [shape: bf16[128,128], index: 2, kind: input, shape index: {}]   ;;  %s1142_s3 = inlined_call_operand.vmem [shape: f32[1,128], index: 3, kind: input, shape index: {}]   ;;  %s1143_s4 = inlined_call_operand.hbm [shape: bf16[128,128], index: 4, kind: input, shape index: {}]   ;;  %s1144_s5 = inlined_call_operand.vmem [shape: f32[1,128], index: 5, kind: input, shape index: {}]   ;;  %s1145_s6 = inlined_call_operand.hbm [shape: bf16[128,128], index: 6, kind: input, shape index: {}]   ;;  %s1146_s7 = inlined_call_operand.hbm [shape: bf16[128,128], index: 7, kind: input, shape index: {}]   ;;  %s1147_s8 = inlined_call_operand.vmem [shape: f32[1,128], index: 8, kind: input, shape index: {}]   ;;  %s1148_s9 = inlined_call_operand.hbm [shape: f32[8,128], index: 9, kind: output, shape index: {}]  }
   0x1   :  { %15 = vsyncpa [#allocation6], 0 }
   0x2   :  { %16 = vsyncpa [#allocation9], 0 }
   0x3   :  { %17 = vsyncpa [#allocation12], 0 }
   0x4   :  { %18 = vsyncpa [#allocation4], 0  ;;  %s933_s30 = smov [#allocation5]   ;;  %s769_s13 = scalar_lea.hbm %s1140_s1, 128 }
   0x5   :  { %s35_s10 = sshll.u32 %s933_s30, 4  ;;  %p770_p0 = scmp.ne.s32.totalorder %s1140_s1, %s769_s13  ;;  %s36_s10 = int_to_ptr.vmem [resolvable:$true] %s35_s10 }
   0x6   :  { %p773_p1 = scmp.lt.u32.totalorder %s769_s13, %s1140_s1 }
   0x8   :  { %p775_p2 = pnand %p773_p1, %p770_p0 }
   0xa   :  { %778 = shalt.err (!%p775_p2)
}
   0xb   :  { %s779_s18 = scalar_lea.vmem %s36_s10, 128  ;;  %p784_p4 = scmp.lt.s32.totalorder %s36_s10, %s36_s10 }
   0xc   :  { %p780_p3 = scmp.ne.s32.totalorder %s36_s10, %s779_s18  ;;  %p785_p5 = scmp.lt.s32.totalorder %s779_s18, %s779_s18 }
   0xe   :  { %p786_p6 = por %p785_p5, %p784_p4 }
  0x10   :  { %p787_p7 = pnand %p786_p6, %p780_p3 }
  0x12   :  { %790 = shalt.err (!%p787_p7)
}
  0x13   :  { %38 = dma.hbm_to_vmem [thread:$0]  %s1140_s1, 128, %s36_s10, [#allocation6]  }
  0x14   :  { %s934_s21 = smov [#allocation8]   ;;  %s935_s23 = smov [#allocation2]  }
  0x15   :  { %s58_s22 = sshll.u32 %s934_s21, 4  ;;  %s25_s24 = sshll.u32 %s935_s23, 4  ;;  %s59_s22 = int_to_ptr.vmem [resolvable:$true] %s58_s22  ;;  %s26_s24 = int_to_ptr.vmem [resolvable:$true] %s25_s24 }
  0x16   :  { %s791_s27 = scalar_lea.hbm %s1143_s4, 1024 }
  0x17   :  { %p792_p8 = scmp.ne.s32.totalorder %s1143_s4, %s791_s27  ;;  %p795_p9 = scmp.lt.u32.totalorder %s791_s27, %s1143_s4 }
  0x19   :  { %p797_p10 = pnand %p795_p9, %p792_p8 }
  0x1b   :  { %800 = shalt.err (!%p797_p10)
}
  0x1c   :  { %s801_s1 = scalar_lea.vmem %s59_s22, 1024  ;;  %p806_p12 = scmp.lt.s32.totalorder %s59_s22, %s59_s22 }
  0x1d   :  { %p802_p11 = scmp.ne.s32.totalorder %s59_s22, %s801_s1  ;;  %p807_p13 = scmp.lt.s32.totalorder %s801_s1, %s801_s1 }
  0x1f   :  { %p808_p0 = por %p807_p13, %p806_p12 }
  0x21   :  { %p809_p1 = pnand %p808_p0, %p802_p11 }
  0x23   :  { %812 = shalt.err (!%p809_p1)
}
  0x24   :  { %s936_s10 = smov 64   ;;  %s937_s12 = smov 4  }
  0x25   :  { %64 = dma.hbm_to_vmem [thread:$0]  %s1143_s4, 1024, %s59_s22, [#allocation9], %s936_s10, %s936_s10, %s937_s12  }
  0x26   :  { %s813_s17 = scalar_lea.hbm %s1139_s0, 128 }
  0x27   :  { %p814_p2 = scmp.ne.s32.totalorder %s1139_s0, %s813_s17  ;;  %p817_p3 = scmp.lt.u32.totalorder %s813_s17, %s1139_s0 }
  0x29   :  { %p819_p4 = pnand %p817_p3, %p814_p2 }
  0x2b   :  { %822 = shalt.err (!%p819_p4)
}
  0x2c   :  { %s823_s23 = scalar_lea.vmem %s26_s24, 128  ;;  %p828_p6 = scmp.lt.s32.totalorder %s26_s24, %s26_s24 }
  0x2d   :  { %p824_p5 = scmp.ne.s32.totalorder %s26_s24, %s823_s23  ;;  %p829_p7 = scmp.lt.s32.totalorder %s823_s23, %s823_s23 }
  0x2f   :  { %p830_p8 = por %p829_p7, %p828_p6 }
  0x31   :  { %p831_p9 = pnand %p830_p8, %p824_p5 }
  0x33   :  { %834 = shalt.err (!%p831_p9)
}
  0x34   :  { %28 = dma.hbm_to_vmem [thread:$0]  %s1139_s0, 128, %s26_s24, [#allocation3]  }
  0x35   :  { %s938_s25 = smov [#allocation7]   ;;  %s939_s27 = smov [#allocation10]  }
  0x36   :  { %s44_s26 = sshll.u32 %s938_s25, 4  ;;  %s72_s28 = sshll.u32 %s939_s27, 4  ;;  %s45_s26 = int_to_ptr.vmem [resolvable:$true] %s44_s26  ;;  %s73_s28 = int_to_ptr.vmem [resolvable:$true] %s72_s28 }
  0x37   :  { %s835_s11 = scalar_lea.hbm %s1141_s2, 1024 }
  0x38   :  { %p836_p10 = scmp.ne.s32.totalorder %s1141_s2, %s835_s11  ;;  %p839_p11 = scmp.lt.u32.totalorder %s835_s11, %s1141_s2 }
  0x3a   :  { %p841_p12 = pnand %p839_p11, %p836_p10 }
  0x3c   :  { %844 = shalt.err (!%p841_p12)
}
  0x3d   :  { %s845_s0 = scalar_lea.vmem %s45_s26, 1024  ;;  %p850_p0 = scmp.lt.s32.totalorder %s45_s26, %s45_s26 }
  0x3e   :  { %p846_p13 = scmp.ne.s32.totalorder %s45_s26, %s845_s0  ;;  %p851_p1 = scmp.lt.s32.totalorder %s845_s0, %s845_s0 }
  0x40   :  { %p852_p2 = por %p851_p1, %p850_p0 }
  0x42   :  { %p853_p3 = pnand %p852_p2, %p846_p13 }
  0x44   :  { %856 = shalt.err (!%p853_p3)
}
  0x45   :  { %50 = dma.hbm_to_vmem [thread:$0]  %s1141_s2, 1024, %s45_s26, [#allocation6], %s936_s10, %s936_s10, %s937_s12  }
  0x46   :  { %s857_s19 = scalar_lea.hbm %s1145_s6, 1024 }
  0x47   :  { %p858_p4 = scmp.ne.s32.totalorder %s1145_s6, %s857_s19  ;;  %p861_p5 = scmp.lt.u32.totalorder %s857_s19, %s1145_s6 }
  0x49   :  { %p863_p6 = pnand %p861_p5, %p858_p4 }
  0x4b   :  { %866 = shalt.err (!%p863_p6)
}
  0x4c   :  { %s867_s22 = scalar_lea.vmem %s73_s28, 1024  ;;  %p872_p8 = scmp.lt.s32.totalorder %s73_s28, %s73_s28 }
  0x4d   :  { %p868_p7 = scmp.ne.s32.totalorder %s73_s28, %s867_s22  ;;  %p873_p9 = scmp.lt.s32.totalorder %s867_s22, %s867_s22 }
  0x4f   :  { %p874_p10 = por %p873_p9, %p872_p8 }
  0x51   :  { %p875_p11 = pnand %p874_p10, %p868_p7 }
  0x53   :  { %878 = shalt.err (!%p875_p11)
}
  0x54   :  { %78 = dma.hbm_to_vmem [thread:$0]  %s1145_s6, 1024, %s73_s28, [#allocation9], %s936_s10, %s936_s10, %s937_s12  }
  0x55   :  { %s940_s26 = smov [#allocation11]   ;;  %s879_s11 = scalar_lea.hbm %s1146_s7, 1024 }
  0x56   :  { %s84_s27 = sshll.u32 %s940_s26, 4  ;;  %p880_p12 = scmp.ne.s32.totalorder %s1146_s7, %s879_s11  ;;  %s85_s27 = int_to_ptr.vmem [resolvable:$true] %s84_s27 }
  0x57   :  { %p883_p13 = scmp.lt.u32.totalorder %s879_s11, %s1146_s7 }
  0x59   :  { %p885_p0 = pnand %p883_p13, %p880_p12 }
  0x5b   :  { %888 = shalt.err (!%p885_p0)
}
  0x5c   :  { %s889_s0 = scalar_lea.vmem %s85_s27, 1024  ;;  %p894_p2 = scmp.lt.s32.totalorder %s85_s27, %s85_s27 }
  0x5d   :  { %p890_p1 = scmp.ne.s32.totalorder %s85_s27, %s889_s0  ;;  %p895_p3 = scmp.lt.s32.totalorder %s889_s0, %s889_s0 }
  0x5f   :  { %p896_p4 = por %p895_p3, %p894_p2 }
  0x61   :  { %p897_p5 = pnand %p896_p4, %p890_p1 }
  0x63   :  { %900 = shalt.err (!%p897_p5)
}
  0x64   :  { %90 = dma.hbm_to_vmem [thread:$0]  %s1146_s7, 1024, %s85_s27, [#allocation12], %s936_s10, %s936_s10, %s937_s12  }
  0x65   :  { %923 = dma.done.wait [#allocation3], 128  }
  0x66   :  { %924 = vsyncadd [#allocation3], 4294967168 }
  0x67   :  { %925 = dma.done.wait [#allocation6], 1152  }
  0x68   :  { %926 = vsyncadd [#allocation6], 4294966144 }
  0x69   :  { %927 = dma.done.wait [#allocation9], 2048  }
  0x6a   :  { %928 = vsyncadd [#allocation9], 4294965248 }
  0x6b   :  { %929 = dma.done.wait [#allocation12], 1024  }
  0x6c   :  { %930 = vsyncadd [#allocation12], 4294966272  ;;  %v941_v0 = vmov 0.0   ;;  %vm942_vm0 = vmmov 0   ;;  %v737_v1 = vld [vmem:[#allocation7] sm:$0xff]   ;;  %v739_v3 = vld [vmem:[#allocation7 + $0x8] sm:$0xff]  }
  0x6d   :  { %646 = vmatprep.subr.bf16.mxu0 %v941_v0  ;;  %666 = vmatprep.subr.bf16.mxu1 %v941_v0  ;;  %v738_v2 = vld [vmem:[#allocation8] sm:$0xff]   ;;  %v740_v4 = vld [vmem:[#allocation8 + $0x8] sm:$0xff]   ;;  %v741_v5 = vld [vmem:[#allocation7 + $0x10] sm:$0xff]  }
  0x6e   :  { %662 = vmatprep.mubr.msk.bf16.mxu0 %vm942_vm0, %v941_v0  ;;  %682 = vmatprep.mubr.msk.bf16.mxu1 %vm942_vm0, %v941_v0  ;;  %v742_v6 = vld [vmem:[#allocation8 + $0x10] sm:$0xff]   ;;  %v743_v7 = vld [vmem:[#allocation7 + $0x18] sm:$0xff]   ;;  %v745_v9 = vld [vmem:[#allocation7 + $0x20] sm:$0xff]  }
  0x6f   :  { %647 = vmatpush3.bf16.msra.mxu0 %v737_v1  ;;  %667 = vmatpush3.bf16.msra.mxu1 %v738_v2  ;;  %v744_v8 = vld [vmem:[#allocation8 + $0x18] sm:$0xff]   ;;  %v746_v10 = vld [vmem:[#allocation8 + $0x20] sm:$0xff]   ;;  %v747_v11 = vld [vmem:[#allocation7 + $0x28] sm:$0xff]  }
  0x70   :  { %648 = vmatprep.subr.bf16.mxu0 %v941_v0  ;;  %668 = vmatprep.subr.bf16.mxu1 %v941_v0  ;;  %v748_v12 = vld [vmem:[#allocation8 + $0x28] sm:$0xff]   ;;  %v749_v13 = vld [vmem:[#allocation7 + $0x30] sm:$0xff]   ;;  %v751_v15 = vld [vmem:[#allocation7 + $0x38] sm:$0xff]  }
  0x71   :  { %v750_v14 = vld [vmem:[#allocation8 + $0x30] sm:$0xff]   ;;  %v752_v16 = vld [vmem:[#allocation8 + $0x38] sm:$0xff]   ;;  %v753_v21 = vld [vmem:[#allocation11] sm:$0xff]  }
  0x72   :  { %v112_v17 = vld [vmem:[#allocation2] sm:$0xff]  ;;  %v225_v18 = vld [vmem:[#allocation5] sm:$0xff]  ;;  %v754_v22 = vld [vmem:[#allocation10] sm:$0xff]  }
  0x73   :  { %649 = vmatpush3.bf16.msra.mxu0 %v739_v3  ;;  %669 = vmatpush3.bf16.msra.mxu1 %v740_v4  ;;  %v113_v19 = vpack.c.bf16 %v112_v17, %v112_v17  ;;  %v226_v20 = vpack.c.bf16 %v225_v18, %v225_v18  ;;  %v755_v23 = vld [vmem:[#allocation11 + $0x8] sm:$0xff]   ;;  %v757_v25 = vld [vmem:[#allocation11 + $0x10] sm:$0xff]   ;;  %v759_v27 = vld [vmem:[#allocation11 + $0x18] sm:$0xff]  }
  0x74   :  { %650 = vmatprep.subr.bf16.mxu0 %v941_v0  ;;  %670 = vmatprep.subr.bf16.mxu1 %v941_v0  ;;  %v756_v24 = vld [vmem:[#allocation10 + $0x8] sm:$0xff]   ;;  %v758_v26 = vld [vmem:[#allocation10 + $0x10] sm:$0xff]   ;;  %v760_v28 = vld [vmem:[#allocation10 + $0x18] sm:$0xff]  }
  0x75   :  { %v761_v29 = vld [vmem:[#allocation11 + $0x20] sm:$0xff]   ;;  %v763_v31 = vld [vmem:[#allocation11 + $0x28] sm:$0xff]   ;;  %v765_v33 = vld [vmem:[#allocation11 + $0x30] sm:$0xff]  }
  0x76   :  { %v762_v30 = vld [vmem:[#allocation10 + $0x20] sm:$0xff]   ;;  %v764_v32 = vld [vmem:[#allocation10 + $0x28] sm:$0xff]   ;;  %v766_v34 = vld [vmem:[#allocation10 + $0x30] sm:$0xff]  }
  0x77   :  { %651 = vmatpush3.bf16.msra.mxu0 %v741_v5  ;;  %671 = vmatpush3.bf16.msra.mxu1 %v742_v6  ;;  %v767_v35 = vld [vmem:[#allocation11 + $0x38] sm:$0xff]   ;;  %v575_v37 = vld [vmem:[%s1142_s3] ss:$0 sm:$0xff] }
  0x78   :  { %652 = vmatprep.subr.bf16.mxu0 %v941_v0  ;;  %672 = vmatprep.subr.bf16.mxu1 %v941_v0  ;;  %v768_v36 = vld [vmem:[#allocation10 + $0x38] sm:$0xff]   ;;  %v584_v38 = vld [vmem:[%s1144_s5] ss:$0 sm:$0xff]  ;;  %s943_s5 = smov [#allocation13]  }
  0x79   :  { %v609_v53 = vld [vmem:[%s1147_s8] ss:$0 sm:$0xff]  ;;  %s563_s17 = sshll.u32 %s943_s5, 4  ;;  %s564_s17 = int_to_ptr.vmem [resolvable:$true] %s563_s17 }
  0x7a   :  { %s901_s18 = scalar_lea.vmem %s564_s17, 128  ;;  %p906_p7 = scmp.lt.s32.totalorder %s564_s17, %s564_s17 }
  0x7b   :  { %653 = vmatpush3.bf16.msra.mxu0 %v743_v7  ;;  %673 = vmatpush3.bf16.msra.mxu1 %v744_v8  ;;  %p902_p6 = scmp.ne.s32.totalorder %s564_s17, %s901_s18  ;;  %p907_p8 = scmp.lt.s32.totalorder %s901_s18, %s901_s18 }
  0x7c   :  { %654 = vmatprep.subr.bf16.mxu0 %v941_v0  ;;  %674 = vmatprep.subr.bf16.mxu1 %v941_v0 }
  0x7d   :  { %p908_p9 = por %p907_p8, %p906_p7 }
  0x7f   :  { %655 = vmatpush3.bf16.msra.mxu0 %v745_v9  ;;  %675 = vmatpush3.bf16.msra.mxu1 %v746_v10  ;;  %p909_p10 = pnand %p908_p9, %p902_p6 }
  0x80   :  { %656 = vmatprep.subr.bf16.mxu0 %v941_v0  ;;  %676 = vmatprep.subr.bf16.mxu1 %v941_v0 }
  0x83   :  { %657 = vmatpush3.bf16.msra.mxu0 %v747_v11  ;;  %677 = vmatpush3.bf16.msra.mxu1 %v748_v12 }
  0x84   :  { %658 = vmatprep.subr.bf16.mxu0 %v941_v0  ;;  %678 = vmatprep.subr.bf16.mxu1 %v941_v0 }
  0x87   :  { %659 = vmatpush3.bf16.msra.mxu0 %v749_v13  ;;  %679 = vmatpush3.bf16.msra.mxu1 %v750_v14 }
  0x88   :  { %660 = vmatprep.subr.bf16.mxu0 %v941_v0  ;;  %680 = vmatprep.subr.bf16.mxu1 %v941_v0 }
  0x8b   :  { %661 = vmatpush3.bf16.msra.mxu0 %v751_v15  ;;  %681 = vmatpush3.bf16.msra.mxu1 %v752_v16 }
  0x8c   :  { %686 = vmatprep.subr.bf16.mxu0 %v941_v0  ;;  %706 = vmatprep.subr.bf16.mxu1 %v941_v0 }
  0x8e   :  { %663 = vmatmul.mubr.bf16.vlgmr.msra.gmra.mrb[0].mxu0 %v113_v19  ;;  %683 = vmatmul.mubr.bf16.vlgmr.msra.gmra.mrb[0].mxu1 %v226_v20 }
  0x8f   :  { %687 = vmatpush3.bf16.msra.mxu0 %v753_v21  ;;  %707 = vmatpush3.bf16.msra.mxu1 %v754_v22 }
  0x90   :  { %688 = vmatprep.subr.bf16.mxu0 %v941_v0  ;;  %708 = vmatprep.subr.bf16.mxu1 %v941_v0 }
  0x91   :  { %702 = vmatprep.mubr.msk.bf16.mxu0 %vm942_vm0, %v941_v0  ;;  %722 = vmatprep.mubr.msk.bf16.mxu1 %vm942_vm0, %v941_v0 }
  0x93   :  { %689 = vmatpush3.bf16.msra.mxu0 %v755_v23  ;;  %709 = vmatpush3.bf16.msra.mxu1 %v756_v24 }
  0x94   :  { %690 = vmatprep.subr.bf16.mxu0 %v941_v0  ;;  %710 = vmatprep.subr.bf16.mxu1 %v941_v0 }
  0x97   :  { %691 = vmatpush3.bf16.msra.mxu0 %v757_v25  ;;  %711 = vmatpush3.bf16.msra.mxu1 %v758_v26 }
  0x98   :  { %692 = vmatprep.subr.bf16.mxu0 %v941_v0  ;;  %712 = vmatprep.subr.bf16.mxu1 %v941_v0 }
  0x9b   :  { %693 = vmatpush3.bf16.msra.mxu0 %v759_v27  ;;  %713 = vmatpush3.bf16.msra.mxu1 %v760_v28 }
  0x9c   :  { %694 = vmatprep.subr.bf16.mxu0 %v941_v0  ;;  %714 = vmatprep.subr.bf16.mxu1 %v941_v0 }
  0x9f   :  { %695 = vmatpush3.bf16.msra.mxu0 %v761_v29  ;;  %715 = vmatpush3.bf16.msra.mxu1 %v762_v30 }
  0xa0   :  { %696 = vmatprep.subr.bf16.mxu0 %v941_v0  ;;  %716 = vmatprep.subr.bf16.mxu1 %v941_v0 }
  0xa3   :  { %697 = vmatpush3.bf16.msra.mxu0 %v763_v31  ;;  %717 = vmatpush3.bf16.msra.mxu1 %v764_v32 }
  0xa4   :  { %698 = vmatprep.subr.bf16.mxu0 %v941_v0  ;;  %718 = vmatprep.subr.bf16.mxu1 %v941_v0 }
  0xa7   :  { %699 = vmatpush3.bf16.msra.mxu0 %v765_v33  ;;  %719 = vmatpush3.bf16.msra.mxu1 %v766_v34 }
  0xa8   :  { %700 = vmatprep.subr.bf16.mxu0 %v941_v0  ;;  %720 = vmatprep.subr.bf16.mxu1 %v941_v0 }
  0xab   :  { %701 = vmatpush3.bf16.msra.mxu0 %v767_v35  ;;  %721 = vmatpush3.bf16.msra.mxu1 %v768_v36 }
 0x161   :  { %v219_v39 = vpop.f32.mrb[0].mxu0  ;;  %v332_v41 = vpop.f32.mrb[0].mxu1 }
 0x162   :  { %v220_v40 = vadd.f32 %v575_v37, %v219_v39  ;;  %v664_v42 = vpop.f32.mrb[1].mxu0  ;;  %v333_v43 = vadd.f32 %v584_v38, %v332_v41  ;;  %v684_v44 = vpop.f32.mrb[1].mxu1 }
 0x163   :  { %v222_v45 = vpop.f32.mrb[2].mxu0  ;;  %v335_v47 = vpop.f32.mrb[2].mxu1 }
 0x164   :  { %v338_v46 = vpack.c.bf16 %v220_v40, %v220_v40  ;;  %v665_v48 = vpop.f32.mrb[3].mxu0  ;;  %v355_v49 = vpack.c.bf16 %v333_v43, %v333_v43  ;;  %v685_v50 = vpop.f32.mrb[3].mxu1 }
 0x166   :  { %723 = vmatmul.mubr.bf16.vlgmr.msra.gmra.mrb[4].mxu1 %v338_v46  ;;  %703 = vmatmul.mubr.bf16.vlgmr.msra.gmra.mrb[4].mxu0 %v355_v49 }
 0x239   :  { %v542_v51 = vpop.f32.mrb[4].mxu1  ;;  %v454_v52 = vpop.f32.mrb[4].mxu0 }
 0x23a   :  { %v724_v54 = vpop.f32.mrb[5].mxu1  ;;  %v543_v55 = vadd.f32 %v542_v51, %v454_v52  ;;  %v704_v56 = vpop.f32.mrb[5].mxu0 }
 0x23b   :  { %v545_v57 = vpop.f32.mrb[6].mxu1  ;;  %v457_v58 = vpop.f32.mrb[6].mxu0 }
 0x23c   :  { %v725_v59 = vpop.f32.mrb[7].mxu1  ;;  %v555_v60 = vadd.f32 %v609_v53, %v543_v55  ;;  %v705_v61 = vpop.f32.mrb[7].mxu0 }
 0x23e   :  { %556 = vst [vmem:[#allocation13] sm:$0xff] %v555_v60 }
 0x23f   :  { %912 = shalt.err (!%p909_p10)
}
 0x240   :  { %s913_s20 = scalar_lea.hbm %s1148_s9, 128 }
 0x241   :  { %p914_p11 = scmp.ne.s32.totalorder %s1148_s9, %s913_s20  ;;  %p917_p12 = scmp.lt.u32.totalorder %s913_s20, %s1148_s9 }
 0x243   :  { %p919_p13 = pnand %p917_p12, %p914_p11 }
 0x245   :  { %922 = shalt.err (!%p919_p13)
}
 0x246   :  { %566 = dma.vmem_to_hbm [thread:$0]  %s564_s17, 128, %s1148_s9, [#allocation4]  }
 0x247   :  { %931 = dma.done.wait [#allocation4], 128  }
 0x248   :  { %932 = vsyncadd [#allocation4], 4294967168 }
 0x249   :  { %570 = vsyncpa [#allocation3], 1 }
 0x24a   :  { %571 = vsyncpa [#allocation6], 1 }
 0x24b   :  { %572 = vsyncpa [#allocation9], 1 }
 0x24c   :  { %573 = vsyncpa [#allocation12], 1 }
 0x24d   :  { %574 = vsyncpa [#allocation4], 1 }

</bundles_post_ra>
